<compile_context>
chip_gen: v5e
topology: v5e:2x2
jax: 0.10.0
libtpu: 0.0.40
codegen_flags: <defaults>
</compile_context>

<pallas_src>
import functools

import jax
import jax.numpy as jnp
from jax.experimental import pallas as pl
from jax.experimental.pallas import tpu as pltpu


def _round_up(x, m):
    return ((x + m - 1) // m) * m


def _vmem_capacity_bytes():
    try:
        info = pltpu.get_tpu_info()
        cap = getattr(info, "vmem_capacity_bytes", None)
        if cap:
            return int(cap)
    except Exception:
        pass
    return 64 << 20  # conservative: v7x per-TensorCore VMEM


def _vq_kernel(x_ref, e_ref, esq_ref, zq_ref, idx_ref, *scratch,
               bf16_scores, kc_size, num_kc):
    """One (row-tile, codebook-chunk) grid step.

    x_ref   : (TM, D)  f32 - tile of flattened z_e rows (resident across chunks)
    e_ref   : (Kc, D)  f32 - codebook chunk
    esq_ref : (1, Kc)  f32 - ||e_k||^2 for the chunk (padded entries = 1e30)
    zq_ref  : (TM, D)  f32 - quantized rows (accumulated across chunks)
    idx_ref : (1, TM)  i32 - argmin codebook indices, lane-dense layout
    scratch : (minsc (TM,1) f32, bidx (TM,1) i32) when num_kc > 1
    """
    kc = pl.program_id(1)

    x = x_ref[...]                                     # (TM, D)
    e = e_ref[...]                                     # (Kc, D)
    xm2 = x * -2.0                                     # fold -2 into the small (TM, D) operand

    if bf16_scores:
        lhs, rhs = xm2.astype(jnp.bfloat16), e.astype(jnp.bfloat16)
    else:
        lhs, rhs = xm2, e
    cross = jax.lax.dot_general(                       # (TM, Kc), f32 accumulate
        lhs, rhs, dimension_numbers=(((1,), (1,)), ((), ())),
        preferred_element_type=jnp.float32)

    # argmin_k ||x - e_k||^2 == argmin_k (||e_k||^2 - 2 x.e_k); ||x||^2 dropped.
    score = esq_ref[...] + cross                       # (TM, Kc)

    local_arg = jnp.argmin(score, axis=1).astype(jnp.int32)            # (TM,)
    onehot = (jax.lax.broadcasted_iota(jnp.int32, score.shape, 1)
              == local_arg[:, None]).astype(jnp.float32)               # (TM, Kc)
    zq_local = jnp.dot(onehot, e, preferred_element_type=jnp.float32)  # exact f32 gather
    gidx = local_arg + kc * kc_size                    # global codebook index

    if num_kc == 1:
        # Single-chunk fast path: no running state, no select passes.
        zq_ref[...] = zq_local.astype(zq_ref.dtype)
        idx_ref[...] = gidx[None, :]                   # (1, TM) full-lane store
        return

    minsc_ref, bidx_ref = scratch
    local_min = jnp.min(score, axis=1, keepdims=True)  # (TM, 1)

    @pl.when(kc == 0)
    def _():
        minsc_ref[...] = jnp.full(minsc_ref.shape, jnp.inf, minsc_ref.dtype)

    upd = local_min < minsc_ref[...]                   # (TM, 1) bool
    minsc_ref[...] = jnp.where(upd, local_min, minsc_ref[...])
    bidx_ref[...] = jnp.where(upd, gidx[:, None], bidx_ref[...])
    zq_ref[...] = jnp.where(upd, zq_local, zq_ref[...]).astype(zq_ref.dtype)

    @pl.when(kc == num_kc - 1)
    def _():
        idx_ref[...] = bidx_ref[...][:, 0][None, :]    # (TM, 1) -> (1, TM) lane-dense


@jax.custom_vjp
def _straight_through(z_e, z_q):
    # Forward: z_e + stop_grad(z_q - z_e) == z_q; return it directly (no extra
    # (N, D) elementwise pass / HBM round-trip).
    return z_q


def _straight_through_fwd(z_e, z_q):
    del z_e
    return z_q, None


def _straight_through_bwd(_, g):
    # d z_q_st / d z_e = identity (straight-through); the detached branch
    # contributes nothing through z_q here.
    return g, jnp.zeros_like(g)


_straight_through.defvjp(_straight_through_fwd, _straight_through_bwd)


@functools.partial(jax.jit, static_argnames=("tm", "kc_max", "bf16_scores"))
def vector_quant_straight_through(z_e, codebook, *, tm=None, kc_max=2048,
                                  bf16_scores=True):
    """Pallas implementation of VectorQuantStraightThrough.forward.

    z_e      : (B, V, C) float32, C == D
    codebook : (K, D)    float32
    tm       : optional row-tile override (rounded to a multiple of 128)
    kc_max   : max codebook-chunk size (multiple of 128)
    returns  : (z_q_st, z_q, indices) -> ((B,V,D), (B,V,D), (B,V) int32)
    """
    B, V, C = z_e.shape
    K, D = codebook.shape
    assert C == D, "channel dim of z_e must equal embedding dim D"

    N = B * V
    x = z_e.reshape(N, D).astype(jnp.float32)
    e = codebook.astype(jnp.float32)

    # ---- codebook padding & K-chunking -------------------------------------
    Kp0 = _round_up(K, 128)

    cap = _vmem_capacity_bytes()
    budget = (cap * 7) // 10              # leave Mosaic / internal-scratch headroom

    def _est_bytes(tm_, kc_):
        b = 4 * (2 * tm_ * D              # x tile (double-buffered)
                 + 2 * tm_ * D            # zq tile (double-buffered)
                 + 2 * kc_ * D            # codebook chunk (double-buffered)
                 + 2 * kc_                # ||e||^2 chunk (double-buffered)
                 + 2 * 8 * tm_            # (1, tm) idx tile, sublane-padded
                 + 4 * tm_ * kc_)         # (TM,Kc) f32 intermediates (+ slack)
        if kc_ < Kp0:                     # running min/argmin scratch, lane-padded
            b += 4 * 2 * 128 * tm_
        return b

    kc = min(Kp0, max(128, (int(kc_max) // 128) * 128))
    if tm is None:
        # Target ~1 MiB x tiles for DMA efficiency, capped at 4096 rows.
        tm_sel = min(4096, _round_up(max((1 << 20) // (4 * D), 256), 128))
    else:
        tm_sel = max(128, (int(tm) // 128) * 128)
    # Shrink tm first, then the codebook chunk, until the footprint fits.
    while _est_bytes(tm_sel, kc) > budget and tm_sel > 128:
        tm_sel = max(128, ((tm_sel // 2) // 128) * 128)
    while _est_bytes(tm_sel, kc) > budget and kc > 128:
        kc = max(128, ((kc // 2) // 128) * 128)

    Kp = _round_up(Kp0, kc)
    num_kc = Kp // kc

    e_sq = jnp.sum(e * e, axis=1)                      # (K,) hoisted out of the kernel
    if Kp != K:
        e = jnp.pad(e, ((0, Kp - K), (0, 0)))
        e_sq = jnp.pad(e_sq, (0, Kp - K), constant_values=1e30)  # padded codes never win
    e_sq = e_sq.reshape(1, Kp)

    # ---- row tiling ---------------------------------------------------------
    if N <= 128:
        tm_eff = N        # single tile: idx lane-density constraint beats megacore here
    else:
        # >=2 row tiles so both v7x TensorCores get work; keep a 128-multiple
        # block so the (1, tm) index stores stay full-lane.
        tm_eff = min(tm_sel, _round_up(pl.cdiv(N, 2), 128))
    num_tiles = pl.cdiv(N, tm_eff)

    est = _est_bytes(max(tm_eff, 128), kc)
    vmem_limit = int(min(max(est * 3 // 2 + (2 << 20), 16 << 20), (cap * 9) // 10))

    kernel = functools.partial(_vq_kernel, bf16_scores=bf16_scores,
                               kc_size=kc, num_kc=num_kc)
    scratch = []
    if num_kc > 1:
        scratch = [pltpu.VMEM((tm_eff, 1), jnp.float32),   # running min score
                   pltpu.VMEM((tm_eff, 1), jnp.int32)]     # running best (global) index

    zq_flat, idx_row = pl.pallas_call(
        kernel,
        out_shape=(
            jax.ShapeDtypeStruct((N, D), jnp.float32),
            jax.ShapeDtypeStruct((1, N), jnp.int32),
        ),
        grid_spec=pltpu.PrefetchScalarGridSpec(
            num_scalar_prefetch=0,
            grid=(num_tiles, num_kc),
            in_specs=[
                pl.BlockSpec((tm_eff, D), lambda i, k: (i, 0)),   # z_e rows (resident over k)
                pl.BlockSpec((kc, D), lambda i, k: (k, 0)),       # codebook chunk
                pl.BlockSpec((1, kc), lambda i, k: (0, k)),       # ||e||^2 chunk
            ],
            out_specs=[
                pl.BlockSpec((tm_eff, D), lambda i, k: (i, 0)),   # z_q rows (revisited over k)
                pl.BlockSpec((1, tm_eff), lambda i, k: (0, i)),   # indices, lane-dense row
            ],
            scratch_shapes=scratch,
        ),
        compiler_params=pltpu.CompilerParams(
            dimension_semantics=("parallel", "arbitrary"),
            vmem_limit_bytes=vmem_limit,
        ),
    )(x, e, e_sq)

    zq = zq_flat.reshape(B, V, D)
    indices = idx_row.reshape(B, V)                    # == indices.view(-1, V) in PyTorch
    z_q_st = _straight_through(z_e.astype(jnp.float32), zq)
    return z_q_st, zq, indices


def _reference(z_e, codebook):
    """Pure-JAX reference mirroring the PyTorch forward."""
    B, V, C = z_e.shape
    x = z_e.reshape(-1, C)
    d = jnp.sum((x[:, None, :] - codebook[None, :, :]) ** 2, axis=-1)
    idx = jnp.argmin(d, axis=1)
    zq = codebook[idx].reshape(z_e.shape)
    z_q_st = z_e + jax.lax.stop_gradient(zq - z_e)
    return z_q_st, zq, idx.reshape(B, V).astype(jnp.int32)


def _check_quantization(z_e, codebook, zq, idx, rel_tol=1e-2, abs_tol=1e-4):
    """Tolerance check for the bf16-score path: chosen codes must be
    (near-)optimal and z_q must equal the selected codebook rows exactly."""
    B, V, C = z_e.shape
    x = z_e.reshape(-1, C)
    d_all = jnp.sum((x[:, None, :] - codebook[None, :, :]) ** 2, axis=-1)
    d_min = jnp.min(d_all, axis=1)
    flat_idx = idx.reshape(-1)
    assert bool(jnp.all((flat_idx >= 0) & (flat_idx < codebook.shape[0]))), "index out of range"
    d_chosen = jnp.sum((x - codebook[flat_idx]) ** 2, axis=-1)
    assert bool(jnp.all(d_chosen <= d_min + abs_tol + rel_tol * d_min)), \
        "bf16 score path selected a non-near-optimal code"
    assert jnp.allclose(zq.reshape(-1, C), codebook[flat_idx], atol=1e-6), \
        "z_q rows must equal the selected codebook entries"


if __name__ == "__main__":
    key = jax.random.PRNGKey(0)
    k1, k2, k3, k4 = jax.random.split(key, 4)

    # Config 1: small shapes matching the module: K=64 codes, D=32 channels, B=2, V=8.
    K, D = 64, 32
    B, V = 2, 8
    codebook = jax.random.uniform(k1, (K, D), jnp.float32, minval=-1.0 / K, maxval=1.0 / K)
    z_e = jax.random.normal(k2, (B, V, D), jnp.float32) * (1.0 / K)

    # (a) exact f32 score path: bit-matches the brute-force reference.
    st, zq, idx = vector_quant_straight_through(z_e, codebook, bf16_scores=False)
    jax.block_until_ready((st, zq, idx))
    r_st, r_zq, r_idx = _reference(z_e, codebook)
    assert jnp.array_equal(idx, r_idx), "indices mismatch (f32)"
    assert jnp.allclose(zq, r_zq, atol=1e-5), "z_q mismatch (f32)"
    assert jnp.allclose(st, r_st, atol=1e-5), "z_q_st mismatch (f32)"
    assert st.shape == (B, V, D) and idx.shape == (B, V)

    # (b) default bf16 score path: near-optimal codes (documented tolerance).
    st_b, zq_b, idx_b = vector_quant_straight_through(z_e, codebook)
    jax.block_until_ready((st_b, zq_b, idx_b))
    _check_quantization(z_e, codebook, zq_b, idx_b)
    assert jnp.allclose(st_b, zq_b), "straight-through forward must equal z_q"

    # Config 2: ragged multi-row-tile grid (N=1200 -> 2 tiles of 640, last masked)
    # plus the multi-K-chunk running-argmin path (K=320, kc_max=128 -> 3 chunks).
    K2 = 320
    B2, V2 = 4, 300
    codebook2 = jax.random.uniform(k3, (K2, D), jnp.float32, minval=-1.0 / K2, maxval=1.0 / K2)
    z_e2 = jax.random.normal(k4, (B2, V2, D), jnp.float32) * (1.0 / K2)

    # (c) exact f32 path through the chunked kernel.
    st2, zq2, idx2 = vector_quant_straight_through(z_e2, codebook2, kc_max=128,
                                                   bf16_scores=False)
    jax.block_until_ready((st2, zq2, idx2))
    r_st2, r_zq2, r_idx2 = _reference(z_e2, codebook2)
    assert jnp.array_equal(idx2, r_idx2), "indices mismatch (f32, chunked/ragged)"
    assert jnp.allclose(zq2, r_zq2, atol=1e-5), "z_q mismatch (f32, chunked/ragged)"
    assert jnp.allclose(st2, r_st2, atol=1e-5), "z_q_st mismatch (f32, chunked/ragged)"

    # (d) default bf16 path through the chunked kernel.
    st3, zq3, idx3 = vector_quant_straight_through(z_e2, codebook2, kc_max=128)
    jax.block_until_ready((st3, zq3, idx3))
    _check_quantization(z_e2, codebook2, zq3, idx3)

    print("KERNEL_OK")
</pallas_src>

<mosaic_0001>
module attributes {stable_mosaic.version = 11 : i64} {
  func.func @_vq_kernel(%arg0: i32, %arg1: i32, %arg2: memref<16x32xf32, #tpu.memory_space<vmem>>, %arg3: memref<128x32xf32, #tpu.memory_space<vmem>>, %arg4: memref<1x128xf32, #tpu.memory_space<vmem>>, %arg5: memref<16x32xf32, #tpu.memory_space<vmem>>, %arg6: memref<1x16xi32, #tpu.memory_space<vmem>>) attributes {dimension_semantics = [#tpu.dimension_semantics<parallel>, #tpu.dimension_semantics<arbitrary>], iteration_bounds = array<i64: 1, 1>, scalar_prefetch = 0 : i64, scratch_operands = 0 : i64, tpu.core_type = #tpu.core_type<tc>, window_params = [{transform_indices = @transform_0, window_bounds = array<i64: 16, 32>}, {transform_indices = @transform_1, window_bounds = array<i64: 128, 32>}, {transform_indices = @transform_2, window_bounds = array<i64: 1, 128>}, {transform_indices = @transform_3, window_bounds = array<i64: 16, 32>}, {transform_indices = @transform_4, window_bounds = array<i64: 1, 16>}]} {
    %c0 = arith.constant 0 : index
    %c0_0 = arith.constant 0 : index
    %0 = vector.load %arg2[%c0, %c0_0] : memref<16x32xf32, #tpu.memory_space<vmem>>, vector<16x32xf32>
    %c0_1 = arith.constant 0 : index
    %c0_2 = arith.constant 0 : index
    %1 = vector.load %arg3[%c0_1, %c0_2] : memref<128x32xf32, #tpu.memory_space<vmem>>, vector<128x32xf32>
    %cst = arith.constant -2.000000e+00 : f32
    %2 = vector.broadcast %cst : f32 to vector<16x32xf32>
    %3 = arith.mulf %0, %2 : vector<16x32xf32>
    %cst_3 = arith.constant dense<0.000000e+00> : vector<16x128xf32>
    %4 = tpu.matmul %3, %1, %cst_3 {dimension_numbers = #tpu.dot_dimension_numbers<[1], [1], [0], [0], [0, 0, 1, 0], [], []>} : vector<16x32xf32>, vector<128x32xf32>, vector<16x128xf32> -> vector<16x128xf32>
    %c0_4 = arith.constant 0 : index
    %c0_5 = arith.constant 0 : index
    %5 = vector.load %arg4[%c0_4, %c0_5] : memref<1x128xf32, #tpu.memory_space<vmem>>, vector<1x128xf32>
    %6 = vector.broadcast %5 : vector<1x128xf32> to vector<16x128xf32>
    %7 = arith.addf %6, %4 : vector<16x128xf32>
    %8 = tpu.reduce_index %7 {axis = 1 : i32, kind = #tpu.reduction_kind<arg_min>} : vector<16x128xf32> -> vector<16xi32>
    %9 = tpu.iota {dimensions = array<i32: 1>} : vector<16x128xi32>
    %10 = vector.shape_cast %8 : vector<16xi32> to vector<16x1xi32>
    %11 = vector.broadcast %10 : vector<16x1xi32> to vector<16x128xi32>
    %12 = arith.cmpi eq, %9, %11 : vector<16x128xi32>
    %13 = arith.extui %12 : vector<16x128xi1> to vector<16x128xi32>
    %14 = arith.sitofp %13 : vector<16x128xi32> to vector<16x128xf32>
    %cst_6 = arith.constant dense<0.000000e+00> : vector<16x32xf32>
    %15 = tpu.matmul %14, %1, %cst_6 {dimension_numbers = #tpu.dot_dimension_numbers<[1], [0], [0], [1], [0, 0, 1, 1], [], []>} : vector<16x128xf32>, vector<128x32xf32>, vector<16x32xf32> -> vector<16x32xf32>
    %c128_i32 = arith.constant 128 : i32
    %16 = arith.muli %arg1, %c128_i32 : i32
    %17 = vector.broadcast %16 : i32 to vector<16xi32>
    %18 = arith.addi %8, %17 : vector<16xi32>
    %c0_7 = arith.constant 0 : index
    %c0_8 = arith.constant 0 : index
    %19 = vector.load %arg5[%c0_7, %c0_8] : memref<16x32xf32, #tpu.memory_space<vmem>>, vector<16x32xf32>
    tpu.vector_store %arg5[%c0_7, %c0_8], %15 {strides = array<i32>} : memref<16x32xf32, #tpu.memory_space<vmem>>, vector<16x32xf32>,
    %20 = vector.shape_cast %18 : vector<16xi32> to vector<1x16xi32>
    %c0_9 = arith.constant 0 : index
    %c0_10 = arith.constant 0 : index
    %21 = vector.load %arg6[%c0_9, %c0_10] : memref<1x16xi32, #tpu.memory_space<vmem>>, vector<1x16xi32>
    tpu.vector_store %arg6[%c0_9, %c0_10], %20 {strides = array<i32>} : memref<1x16xi32, #tpu.memory_space<vmem>>, vector<1x16xi32>,
    return
  }
  func.func @transform_0(%arg0: i32, %arg1: i32) -> (i32, i32) {
    %c0_i32 = arith.constant 0 : i32
    %c0_i32_0 = arith.constant 0 : i32
    return %arg0, %c0_i32 : i32, i32
  }
  func.func @transform_1(%arg0: i32, %arg1: i32) -> (i32, i32) {
    %c0_i32 = arith.constant 0 : i32
    %c0_i32_0 = arith.constant 0 : i32
    return %arg1, %c0_i32 : i32, i32
  }
  func.func @transform_2(%arg0: i32, %arg1: i32) -> (i32, i32) {
    %c0_i32 = arith.constant 0 : i32
    %c0_i32_0 = arith.constant 0 : i32
    return %c0_i32, %arg1 : i32, i32
  }
  func.func @transform_3(%arg0: i32, %arg1: i32) -> (i32, i32) {
    %c0_i32 = arith.constant 0 : i32
    %c0_i32_0 = arith.constant 0 : i32
    return %arg0, %c0_i32 : i32, i32
  }
  func.func @transform_4(%arg0: i32, %arg1: i32) -> (i32, i32) {
    %c0_i32 = arith.constant 0 : i32
    %c0_i32_0 = arith.constant 0 : i32
    return %c0_i32, %arg0 : i32, i32
  }
}

</mosaic_0001>

<bundles_post_ra>
// kernel: vector_quant_straight_through.1
= control target key start
LH: loop header
LB: loop body
LE: loop exit
PB: predicated region body
PF: predicated region fallthrough
CT: control target
= control target key end

     0   :  { %vm36_vm0 = vcmask 261120   ;;  %v124_v25 = vlaneseq  ;;  %v216_v28 = vmov 1.0   ;;  %vm164_vm2 = vcmask 130112   ;;  %s344_s1 = inlined_call_operand.vmem [shape: f32[128,32], index: 1, kind: input, shape index: {}]   ;;  %s345_s0 = inlined_call_operand.vmem [shape: f32[16,32], index: 0, kind: input, shape index: {}]   ;;  %s346_s2 = inlined_call_operand.vmem [shape: f32[1,128], index: 2, kind: input, shape index: {}]   ;;  %s347_s4 = inlined_call_operand.vmem [shape: s32[1,16], index: 4, kind: output, shape index: {1}]   ;;  %s348_s3 = inlined_call_operand.vmem [shape: f32[16,32], index: 3, kind: output, shape index: {0}]  }
   0x1   :  { %v33_v0 = vld [vmem:[%s344_s1 + $0x78] sm:$0xff]  ;;  %v32_v1 = vld [vmem:[%s344_s1 + $0x70] sm:$0xff]  ;;  %v31_v2 = vld [vmem:[%s344_s1 + $0x68] sm:$0xff]  ;;  %vm166_vm3 = vcmask 122880  }
   0x2   :  { %176 = vmatpush.xpose.msk.msra.mxu0 %vm36_vm0, %v33_v0  ;;  %198 = vmatpush.xpose.msk.msra.mxu2 %vm36_vm0, %v33_v0  ;;  %v30_v3 = vld [vmem:[%s344_s1 + $0x60] sm:$0xff]  ;;  %v29_v4 = vld [vmem:[%s344_s1 + $0x58] sm:$0xff]  ;;  %v28_v5 = vld [vmem:[%s344_s1 + $0x50] sm:$0xff]  ;;  %v125_v26 = vand.u32 127, %v124_v25 }
   0x3   :  { %132 = vmatpush.msra.mxu1 %v33_v0  ;;  %v27_v6 = vld [vmem:[%s344_s1 + $0x48] sm:$0xff]  ;;  %v26_v7 = vld [vmem:[%s344_s1 + $0x40] sm:$0xff]  ;;  %v25_v8 = vld [vmem:[%s344_s1 + $0x38] sm:$0xff] }
   0x4   :  { %v24_v9 = vld [vmem:[%s344_s1 + $0x30] sm:$0xff]  ;;  %v23_v10 = vld [vmem:[%s344_s1 + $0x28] sm:$0xff]  ;;  %v22_v11 = vld [vmem:[%s344_s1 + $0x20] sm:$0xff]  ;;  %v162_v29 = vadd.s32 4294967288, %v125_v26 }
   0x5   :  { %133 = vmatpush.msra.mxu1 %v32_v1  ;;  %v21_v12 = vld [vmem:[%s344_s1 + $0x18] sm:$0xff]  ;;  %v20_v13 = vld [vmem:[%s344_s1 + $0x10] sm:$0xff]  ;;  %v19_v14 = vld [vmem:[%s344_s1 + $0x8] sm:$0xff] }
   0x6   :  { %177 = vmatpush.xpose.msk.msra.mxu0 %vm36_vm0, %v32_v1  ;;  %199 = vmatpush.xpose.msk.msra.mxu2 %vm36_vm0, %v32_v1  ;;  %v18_v15 = vld [vmem:[%s344_s1] sm:$0xff]  ;;  %v17_v17 = vld [vmem:[%s345_s0 + $0x8] sm:$0xff] }
   0x7   :  { %134 = vmatpush.msra.mxu1 %v31_v2  ;;  %v16_v16 = vld [vmem:[%s345_s0] sm:$0xff]  ;;  %v35_v19 = vmul.f32 -2.0, %v17_v17 }
   0x8   :  { %v34_v18 = vmul.f32 -2.0, %v16_v16  ;;  %v215_v20 = vld [vmem:[%s346_s2] ss:$0 sm:$0xff] }
   0x9   :  { %135 = vmatpush.msra.mxu1 %v30_v3 }
   0xa   :  { %178 = vmatpush.xpose.msk.msra.mxu0 %vm36_vm0, %v31_v2  ;;  %200 = vmatpush.xpose.msk.msra.mxu2 %vm36_vm0, %v31_v2 }
   0xb   :  { %136 = vmatpush.msra.mxu1 %v29_v4 }
   0xd   :  { %137 = vmatpush.msra.mxu1 %v28_v5 }
   0xe   :  { %179 = vmatpush.xpose.msk.msra.mxu0 %vm36_vm0, %v30_v3  ;;  %201 = vmatpush.xpose.msk.msra.mxu2 %vm36_vm0, %v30_v3 }
   0xf   :  { %138 = vmatpush.msra.mxu1 %v27_v6 }
  0x11   :  { %139 = vmatpush.msra.mxu1 %v26_v7 }
  0x12   :  { %180 = vmatpush.xpose.msk.msra.mxu0 %vm36_vm0, %v29_v4  ;;  %202 = vmatpush.xpose.msk.msra.mxu2 %vm36_vm0, %v29_v4 }
  0x13   :  { %140 = vmatpush.msra.mxu1 %v25_v8 }
  0x15   :  { %141 = vmatpush.msra.mxu1 %v24_v9 }
  0x16   :  { %181 = vmatpush.xpose.msk.msra.mxu0 %vm36_vm0, %v28_v5  ;;  %203 = vmatpush.xpose.msk.msra.mxu2 %vm36_vm0, %v28_v5 }
  0x17   :  { %142 = vmatpush.msra.mxu1 %v23_v10 }
  0x19   :  { %143 = vmatpush.msra.mxu1 %v22_v11 }
  0x1a   :  { %182 = vmatpush.xpose.msk.msra.mxu0 %vm36_vm0, %v27_v6  ;;  %204 = vmatpush.xpose.msk.msra.mxu2 %vm36_vm0, %v27_v6 }
  0x1b   :  { %144 = vmatpush.msra.mxu1 %v21_v12 }
  0x1d   :  { %145 = vmatpush.msra.mxu1 %v20_v13 }
  0x1e   :  { %183 = vmatpush.xpose.msk.msra.mxu0 %vm36_vm0, %v26_v7  ;;  %205 = vmatpush.xpose.msk.msra.mxu2 %vm36_vm0, %v26_v7 }
  0x1f   :  { %146 = vmatpush.msra.mxu1 %v19_v14 }
  0x21   :  { %147 = vmatpush.msra.mxu1 %v18_v15 }
  0x22   :  { %184 = vmatpush.xpose.msk.msra.mxu0 %vm36_vm0, %v25_v8  ;;  %206 = vmatpush.xpose.msk.msra.mxu2 %vm36_vm0, %v25_v8 }
  0x26   :  { %185 = vmatpush.xpose.msk.msra.mxu0 %vm36_vm0, %v24_v9  ;;  %207 = vmatpush.xpose.msk.msra.mxu2 %vm36_vm0, %v24_v9 }
  0x2a   :  { %186 = vmatpush.xpose.msk.msra.mxu0 %vm36_vm0, %v23_v10  ;;  %208 = vmatpush.xpose.msk.msra.mxu2 %vm36_vm0, %v23_v10 }
  0x2e   :  { %187 = vmatpush.xpose.msk.msra.mxu0 %vm36_vm0, %v22_v11  ;;  %209 = vmatpush.xpose.msk.msra.mxu2 %vm36_vm0, %v22_v11 }
  0x32   :  { %188 = vmatpush.xpose.msk.msra.mxu0 %vm36_vm0, %v21_v12  ;;  %210 = vmatpush.xpose.msk.msra.mxu2 %vm36_vm0, %v21_v12 }
  0x36   :  { %189 = vmatpush.xpose.msk.msra.mxu0 %vm36_vm0, %v20_v13  ;;  %211 = vmatpush.xpose.msk.msra.mxu2 %vm36_vm0, %v20_v13 }
  0x3a   :  { %190 = vmatpush.xpose.msk.msra.mxu0 %vm36_vm0, %v19_v14  ;;  %212 = vmatpush.xpose.msk.msra.mxu2 %vm36_vm0, %v19_v14 }
  0x3e   :  { %191 = vmatpush.xpose.msk.msra.mxu0 %vm36_vm0, %v18_v15  ;;  %213 = vmatpush.xpose.msk.msra.mxu2 %vm36_vm0, %v18_v15 }
  0x41   :  { %192 = vmatmul.msk.f32.vlgmr.msra.gmra.mxu0 %vm36_vm0, %v34_v18  ;;  %193 = vmatmul.msk.f32.vlgmr.msra.gmra.mxu2 %vm36_vm0, %v35_v19 }
  0xbe   :  { %v108_v21 = vpop.f32.mrf.mxu0 }
  0xbf   :  { %v118_v22 = vadd.f32 %v215_v20, %v108_v21 }
  0xc1   :  { %120 = vmin.index.xlane.f32.xlu0 %v118_v22 }
  0xc4   :  { %v111_v23 = vpop.f32.mrf.mxu2 }
  0xc5   :  { %v119_v24 = vadd.f32 %v215_v20, %v111_v23 }
  0xc9   :  { %122 = vmin.index.xlane.f32.xlu0 %v119_v24 }
 0x134   :  { %v121_v27 = vpop.xlane.xlu0 %120 }
 0x135   :  { %vm126_vm1 = vcmp.eq.s32.totalorder %v125_v26, %v121_v27  ;;  %v161_v31 = vperm.slane %v121_v27, %v125_v26 }
 0x136   :  { %196 = vmatmul.msk.f32.vlgmr.msra.gmra.mxu1 %vm126_vm1, %v216_v28 }
 0x13c   :  { %v123_v30 = vpop.xlane.xlu0 %122 }
 0x13d   :  { %vm127_vm4 = vcmp.eq.s32.totalorder %v125_v26, %v123_v30  ;;  %v163_v32 = vperm.slane %v123_v30, %v162_v29 }
 0x13e   :  { %197 = vmatmul.msk.f32.gmra.mxu1 %vm127_vm4, %v216_v28 }
 0x13f   :  { %v165_v33 = vsel %vm164_vm2, %v163_v32, %v161_v31 }
 0x140   :  { %167 = vst.msk [vmem:[%s347_s4] sm:$0x1] %vm166_vm3, %v165_v33 }
 0x1b3   :  { %v149_v34 = vpop.f32.mrf.mxu1 }
 0x1b4   :  { %159 = vst.msk [vmem:[%s348_s3] sm:$0xff] %vm36_vm0, %v149_v34 }
 0x1bb   :  { %v152_v35 = vpop.f32.mrf.mxu1 }
 0x1bc   :  { %160 = vst.msk [vmem:[%s348_s3 + $0x8] sm:$0xff] %vm36_vm0, %v152_v35 }

</bundles_post_ra>
